<compile_context>
chip_gen: v7x
topology: tpu7x:2x2x1
jax: 0.10.0
libtpu: 0.0.40
codegen_flags: <defaults>
</compile_context>

<pallas_src>
import functools

import jax
import jax.numpy as jnp
import numpy as np
from jax.experimental import pallas as pl
from jax.experimental.pallas import tpu as pltpu

F_PAD = 128   # padded hidden width (lane axis)
X_PAD = 8     # packed input width: lanes 0:3 = site_a, lanes 3:6 = site_x
LANE_A = 0
LANE_X = 3


def _fullnet_kernel(scal_ref,    # SMEM (2,)       [bx, b5]
                    xin_ref,     # VMEM (TB, 8)    packed [site_a | site_x]
                    wx_ref,      # VMEM (1, 8)     NetX weight on lanes 3:6
                    rows_ref,    # VMEM (8, 128)   [W1 col0..3, b1, b2, b3, b4]
                    w2_ref,      # VMEM (128, 128)
                    w3_ref,      # VMEM (128, 128)
                    w4_ref,      # VMEM (128, 128)
                    w5_ref,      # VMEM (1, 128)   W5 row on lanes 0:32
                    out_ref):    # VMEM (TB, 1)
    xin = xin_ref[...]
    rows = rows_ref[...]

    # --- NetX: rank-1 Linear(3,1) + exp.  Lane-masked multiply + 8-lane
    # reduce (VPU/XLU) + EUP exp instead of an MXU pass on a mostly-zero mat.
    z = jnp.sum(xin * wx_ref[...], axis=-1, keepdims=True) + scal_ref[0]
    ex = jnp.exp(z)                                           # (TB, 1)

    # --- Layer 1: concat([site_a, netX(site_x)]) @ W1^T + b1, as a sum of
    # four rank-1 outer products (contract dim is only 4 -> pure VPU).
    h = (xin[:, 0:1] * rows[0:1, :]
         + xin[:, 1:2] * rows[1:2, :]
         + xin[:, 2:3] * rows[2:3, :]
         + ex * rows[3:4, :]
         + rows[4:5, :])
    h = jnp.maximum(h, 0.0)

    # --- Layers 2-4: MXU matmuls against VMEM-resident padded weights.
    h = jnp.maximum(
        jnp.dot(h, w2_ref[...], preferred_element_type=jnp.float32)
        + rows[5:6, :], 0.0)
    h = jnp.maximum(
        jnp.dot(h, w3_ref[...], preferred_element_type=jnp.float32)
        + rows[6:7, :], 0.0)
    h = jnp.maximum(
        jnp.dot(h, w4_ref[...], preferred_element_type=jnp.float32)
        + rows[7:8, :], 0.0)

    # --- Layer 5: Linear(32,1) as masked multiply + cross-lane reduce (XLU),
    # writing a lane-packed (TB, 1) block (4 B/row of HBM writeback).
    out_ref[...] = (jnp.sum(h * w5_ref[...], axis=-1, keepdims=True)
                    + scal_ref[1])


# -------------------- parameter preparation (one-time) ----------------------

def _pad_weight_t(w, fin_pad=F_PAD, fout_pad=F_PAD):
    """PyTorch Linear weight [out, in] -> zero-padded transposed [in_pad, out_pad]."""
    wt = jnp.asarray(w, jnp.float32).T
    out = jnp.zeros((fin_pad, fout_pad), jnp.float32)
    return out.at[:wt.shape[0], :wt.shape[1]].set(wt)


def _pad_row(v, width=F_PAD, offset=0):
    v = jnp.asarray(v, jnp.float32).reshape(-1)
    out = jnp.zeros((width,), jnp.float32)
    return out.at[offset:offset + v.shape[0]].set(v)


def prepare_params(params):
    """Pre-pad / pre-transpose / pre-pack all weights once (off the hot path)."""
    p = {}
    # Two true scalars live in SMEM: NetX bias and the final output bias.
    p["scal"] = jnp.stack(
        [jnp.asarray(params["bx"], jnp.float32).reshape(()),
         jnp.asarray(params["b5"], jnp.float32).reshape(())])
    # NetX weight as a (1, 8) row aligned with site_x's packed lanes 3:6.
    p["wxrow"] = _pad_row(params["Wx"][0], width=X_PAD, offset=LANE_X)[None, :]
    # One (8, 128) slab holding W1's 4 columns + biases b1..b4.
    p["rows"] = jnp.stack([_pad_row(params["W1"][:, 0]),
                           _pad_row(params["W1"][:, 1]),
                           _pad_row(params["W1"][:, 2]),
                           _pad_row(params["W1"][:, 3]),
                           _pad_row(params["b1"]),
                           _pad_row(params["b2"]),
                           _pad_row(params["b3"]),
                           _pad_row(params["b4"])])
    p["w2"] = _pad_weight_t(params["W2"])
    p["w3"] = _pad_weight_t(params["W3"])
    p["w4"] = _pad_weight_t(params["W4"])
    p["w5row"] = _pad_row(params["W5"][0])[None, :]     # (1, 128)
    return p


def init_params(key):
    """Deterministic parameter init matching the module's shapes/init."""
    ks = jax.random.split(key, 16)

    def torch_linear(kw, kb, fan_out, fan_in):
        bound = 1.0 / np.sqrt(fan_in)
        w = jax.random.uniform(kw, (fan_out, fan_in), jnp.float32, -bound, bound)
        b = jax.random.uniform(kb, (fan_out,), jnp.float32, -bound, bound)
        return w, b

    params = {}
    # NetX: Linear(3, 1) with uniform_(0, 1) weight, zero bias.
    params["Wx"] = jax.random.uniform(ks[0], (1, 3), jnp.float32, 0.0, 1.0)
    params["bx"] = jnp.zeros((1,), jnp.float32)
    # combination_net
    params["W1"], params["b1"] = torch_linear(ks[1], ks[2], 64, 4)
    params["W2"], params["b2"] = torch_linear(ks[3], ks[4], 64, 64)
    params["W3"], params["b3"] = torch_linear(ks[5], ks[6], 64, 64)
    params["W4"], params["b4"] = torch_linear(ks[7], ks[8], 32, 64)
    params["W5"], params["b5"] = torch_linear(ks[9], ks[10], 1, 32)
    return params


# ------------------------------ forward call ---------------------------------

@functools.partial(jax.jit, static_argnames=("block_rows",))
def fullnet_pallas(padded, site_a, site_x, *, block_rows=1024):
    B = site_a.shape[0]
    B8 = ((B + 7) // 8) * 8
    TB = min(max(8, (block_rows // 8) * 8), B8)   # batch tile (multiple of 8)
    Bp = ((B8 + TB - 1) // TB) * TB               # padded batch (multiple of TB)
    grid = (Bp // TB,)

    # Pack both 3-feature inputs into one narrow (Bp, 8) slab.
    xin = jnp.zeros((Bp, X_PAD), jnp.float32)
    xin = xin.at[:B, LANE_A:LANE_A + 3].set(site_a.astype(jnp.float32))
    xin = xin.at[:B, LANE_X:LANE_X + 3].set(site_x.astype(jnp.float32))

    xin_spec = pl.BlockSpec((TB, X_PAD), lambda i: (i, 0))
    wx_spec = pl.BlockSpec((1, X_PAD), lambda i: (0, 0))        # resident
    rows_spec = pl.BlockSpec((8, F_PAD), lambda i: (0, 0))      # resident
    wmat_spec = pl.BlockSpec((F_PAD, F_PAD), lambda i: (0, 0))  # resident
    w5_spec = pl.BlockSpec((1, F_PAD), lambda i: (0, 0))        # resident
    out_spec = pl.BlockSpec((TB, 1), lambda i: (i, 0))
    smem_spec = pl.BlockSpec(memory_space=pltpu.MemorySpace.SMEM)

    out = pl.pallas_call(
        _fullnet_kernel,
        out_shape=jax.ShapeDtypeStruct((Bp, 1), jnp.float32),
        grid=grid,
        in_specs=[smem_spec,                 # [bx, b5]
                  xin_spec,                  # packed activations
                  wx_spec,                   # NetX weight row
                  rows_spec,                 # W1 columns + b1..b4
                  wmat_spec, wmat_spec, wmat_spec,   # w2, w3, w4
                  w5_spec],                  # W5 row
        out_specs=out_spec,
        compiler_params=pltpu.CompilerParams(
            dimension_semantics=("parallel",)),
    )(padded["scal"], xin, padded["wxrow"], padded["rows"],
      padded["w2"], padded["w3"], padded["w4"], padded["w5row"])

    return out[:B]


def fullnet_reference(params, site_a, site_x):
    """Pure-JAX reference mirroring the PyTorch forward."""
    ox = jnp.exp(site_x @ params["Wx"].T + params["bx"])
    c = jnp.concatenate([site_a, ox], axis=1)
    h = jnp.maximum(c @ params["W1"].T + params["b1"], 0.0)
    h = jnp.maximum(h @ params["W2"].T + params["b2"], 0.0)
    h = jnp.maximum(h @ params["W3"].T + params["b3"], 0.0)
    h = jnp.maximum(h @ params["W4"].T + params["b4"], 0.0)
    return h @ params["W5"].T + params["b5"]


if __name__ == "__main__":
    key = jax.random.PRNGKey(0)
    kp, ka, kx = jax.random.split(key, 3)

    params = init_params(kp)
    padded = prepare_params(params)   # one-time weight padding (off hot path)

    # Small primary check: B=8 (single grid step).
    B = 8
    site_a = jax.random.normal(ka, (B, 3), jnp.float32)
    site_x = jax.random.normal(kx, (B, 3), jnp.float32)
    out = jax.block_until_ready(fullnet_pallas(padded, site_a, site_x))
    ref = fullnet_reference(params, site_a, site_x)
    assert out.shape == (B, 1), out.shape
    np.testing.assert_allclose(np.asarray(out), np.asarray(ref),
                               rtol=1e-5, atol=1e-5)

    # Exercise the multi-block pipelined batch grid (grid=(5,), TB=8).
    B2 = 40
    ka2, kx2 = jax.random.split(jax.random.PRNGKey(1), 2)
    site_a2 = jax.random.normal(ka2, (B2, 3), jnp.float32)
    site_x2 = jax.random.normal(kx2, (B2, 3), jnp.float32)
    out2 = jax.block_until_ready(
        fullnet_pallas(padded, site_a2, site_x2, block_rows=8))
    ref2 = fullnet_reference(params, site_a2, site_x2)
    np.testing.assert_allclose(np.asarray(out2), np.asarray(ref2),
                               rtol=1e-5, atol=1e-5)

    # Ragged batch (B not a multiple of 8) to exercise padding + output slice.
    B3 = 13
    ka3, kx3 = jax.random.split(jax.random.PRNGKey(2), 2)
    site_a3 = jax.random.normal(ka3, (B3, 3), jnp.float32)
    site_x3 = jax.random.normal(kx3, (B3, 3), jnp.float32)
    out3 = jax.block_until_ready(fullnet_pallas(padded, site_a3, site_x3))
    ref3 = fullnet_reference(params, site_a3, site_x3)
    np.testing.assert_allclose(np.asarray(out3), np.asarray(ref3),
                               rtol=1e-5, atol=1e-5)

    print("KERNEL_OK")
</pallas_src>

<mosaic_0001>
module attributes {stable_mosaic.version = 11 : i64} {
  func.func @_fullnet_kernel(%arg0: i32, %arg1: memref<2xf32, #tpu.memory_space<smem>>, %arg2: memref<8x8xf32, #tpu.memory_space<vmem>>, %arg3: memref<1x8xf32, #tpu.memory_space<vmem>>, %arg4: memref<8x128xf32, #tpu.memory_space<vmem>>, %arg5: memref<128x128xf32, #tpu.memory_space<vmem>>, %arg6: memref<128x128xf32, #tpu.memory_space<vmem>>, %arg7: memref<128x128xf32, #tpu.memory_space<vmem>>, %arg8: memref<1x128xf32, #tpu.memory_space<vmem>>, %arg9: memref<8x1xf32, #tpu.memory_space<vmem>>) attributes {dimension_semantics = [#tpu.dimension_semantics<parallel>], iteration_bounds = array<i64: 1>, scalar_prefetch = 0 : i64, scratch_operands = 0 : i64, tpu.core_type = #tpu.core_type<tc>, window_params = [{transform_indices = @transform_0, window_bounds = array<i64: 2>}, {transform_indices = @transform_1, window_bounds = array<i64: 8, 8>}, {pipeline_mode = #tpu.pipeline_mode<synchronous>, transform_indices = @transform_2, window_bounds = array<i64: 1, 8>}, {pipeline_mode = #tpu.pipeline_mode<synchronous>, transform_indices = @transform_3, window_bounds = array<i64: 8, 128>}, {pipeline_mode = #tpu.pipeline_mode<synchronous>, transform_indices = @transform_4, window_bounds = array<i64: 128, 128>}, {pipeline_mode = #tpu.pipeline_mode<synchronous>, transform_indices = @transform_5, window_bounds = array<i64: 128, 128>}, {pipeline_mode = #tpu.pipeline_mode<synchronous>, transform_indices = @transform_6, window_bounds = array<i64: 128, 128>}, {pipeline_mode = #tpu.pipeline_mode<synchronous>, transform_indices = @transform_7, window_bounds = array<i64: 1, 128>}, {transform_indices = @transform_8, window_bounds = array<i64: 8, 1>}]} {
    %c0 = arith.constant 0 : index
    %c0_0 = arith.constant 0 : index
    %0 = vector.load %arg2[%c0, %c0_0] : memref<8x8xf32, #tpu.memory_space<vmem>>, vector<8x8xf32>
    %c0_1 = arith.constant 0 : index
    %c0_2 = arith.constant 0 : index
    %1 = vector.load %arg4[%c0_1, %c0_2] : memref<8x128xf32, #tpu.memory_space<vmem>>, vector<8x128xf32>
    %c0_3 = arith.constant 0 : index
    %c0_4 = arith.constant 0 : index
    %2 = vector.load %arg3[%c0_3, %c0_4] : memref<1x8xf32, #tpu.memory_space<vmem>>, vector<1x8xf32>
    %3 = vector.broadcast %2 : vector<1x8xf32> to vector<8x8xf32>
    %4 = arith.mulf %0, %3 : vector<8x8xf32>
    %cst = arith.constant dense<0.000000e+00> : vector<8xf32>
    %5 = vector.multi_reduction <add>, %4, %cst [1] : vector<8x8xf32> to vector<8xf32>
    %6 = vector.shape_cast %5 : vector<8xf32> to vector<8x1xf32>
    %c0_5 = arith.constant 0 : index
    %7 = memref.load %arg1[%c0_5] : memref<2xf32, #tpu.memory_space<smem>>
    %8 = vector.broadcast %7 : f32 to vector<8x1xf32>
    %9 = arith.addf %6, %8 : vector<8x1xf32>
    %10 = math.exp %9 : vector<8x1xf32>
    %11 = vector.extract_strided_slice %0 {offsets = [0, 0], sizes = [8, 1], strides = [1, 1]} : vector<8x8xf32> to vector<8x1xf32>
    %12 = vector.extract_strided_slice %1 {offsets = [0, 0], sizes = [1, 128], strides = [1, 1]} : vector<8x128xf32> to vector<1x128xf32>
    %13 = vector.broadcast %11 : vector<8x1xf32> to vector<8x128xf32>
    %14 = vector.broadcast %12 : vector<1x128xf32> to vector<8x128xf32>
    %15 = arith.mulf %13, %14 : vector<8x128xf32>
    %16 = vector.extract_strided_slice %0 {offsets = [0, 1], sizes = [8, 1], strides = [1, 1]} : vector<8x8xf32> to vector<8x1xf32>
    %17 = vector.extract_strided_slice %1 {offsets = [1, 0], sizes = [1, 128], strides = [1, 1]} : vector<8x128xf32> to vector<1x128xf32>
    %18 = vector.broadcast %16 : vector<8x1xf32> to vector<8x128xf32>
    %19 = vector.broadcast %17 : vector<1x128xf32> to vector<8x128xf32>
    %20 = arith.mulf %18, %19 : vector<8x128xf32>
    %21 = arith.addf %15, %20 : vector<8x128xf32>
    %22 = vector.extract_strided_slice %0 {offsets = [0, 2], sizes = [8, 1], strides = [1, 1]} : vector<8x8xf32> to vector<8x1xf32>
    %23 = vector.extract_strided_slice %1 {offsets = [2, 0], sizes = [1, 128], strides = [1, 1]} : vector<8x128xf32> to vector<1x128xf32>
    %24 = vector.broadcast %22 : vector<8x1xf32> to vector<8x128xf32>
    %25 = vector.broadcast %23 : vector<1x128xf32> to vector<8x128xf32>
    %26 = arith.mulf %24, %25 : vector<8x128xf32>
    %27 = arith.addf %21, %26 : vector<8x128xf32>
    %28 = vector.extract_strided_slice %1 {offsets = [3, 0], sizes = [1, 128], strides = [1, 1]} : vector<8x128xf32> to vector<1x128xf32>
    %29 = vector.broadcast %10 : vector<8x1xf32> to vector<8x128xf32>
    %30 = vector.broadcast %28 : vector<1x128xf32> to vector<8x128xf32>
    %31 = arith.mulf %29, %30 : vector<8x128xf32>
    %32 = arith.addf %27, %31 : vector<8x128xf32>
    %33 = vector.extract_strided_slice %1 {offsets = [4, 0], sizes = [1, 128], strides = [1, 1]} : vector<8x128xf32> to vector<1x128xf32>
    %34 = vector.broadcast %33 : vector<1x128xf32> to vector<8x128xf32>
    %35 = arith.addf %32, %34 : vector<8x128xf32>
    %cst_6 = arith.constant 0.000000e+00 : f32
    %36 = vector.broadcast %cst_6 : f32 to vector<8x128xf32>
    %37 = arith.maximumf %35, %36 : vector<8x128xf32>
    %c0_7 = arith.constant 0 : index
    %c0_8 = arith.constant 0 : index
    %38 = vector.load %arg5[%c0_7, %c0_8] : memref<128x128xf32, #tpu.memory_space<vmem>>, vector<128x128xf32>
    %cst_9 = arith.constant dense<0.000000e+00> : vector<8x128xf32>
    %39 = tpu.matmul %37, %38, %cst_9 {dimension_numbers = #tpu.dot_dimension_numbers<[1], [0], [0], [1], [0, 0, 1, 1], [], []>} : vector<8x128xf32>, vector<128x128xf32>, vector<8x128xf32> -> vector<8x128xf32>
    %40 = vector.extract_strided_slice %1 {offsets = [5, 0], sizes = [1, 128], strides = [1, 1]} : vector<8x128xf32> to vector<1x128xf32>
    %41 = vector.broadcast %40 : vector<1x128xf32> to vector<8x128xf32>
    %42 = arith.addf %39, %41 : vector<8x128xf32>
    %cst_10 = arith.constant 0.000000e+00 : f32
    %43 = vector.broadcast %cst_10 : f32 to vector<8x128xf32>
    %44 = arith.maximumf %42, %43 : vector<8x128xf32>
    %c0_11 = arith.constant 0 : index
    %c0_12 = arith.constant 0 : index
    %45 = vector.load %arg6[%c0_11, %c0_12] : memref<128x128xf32, #tpu.memory_space<vmem>>, vector<128x128xf32>
    %cst_13 = arith.constant dense<0.000000e+00> : vector<8x128xf32>
    %46 = tpu.matmul %44, %45, %cst_13 {dimension_numbers = #tpu.dot_dimension_numbers<[1], [0], [0], [1], [0, 0, 1, 1], [], []>} : vector<8x128xf32>, vector<128x128xf32>, vector<8x128xf32> -> vector<8x128xf32>
    %47 = vector.extract_strided_slice %1 {offsets = [6, 0], sizes = [1, 128], strides = [1, 1]} : vector<8x128xf32> to vector<1x128xf32>
    %48 = vector.broadcast %47 : vector<1x128xf32> to vector<8x128xf32>
    %49 = arith.addf %46, %48 : vector<8x128xf32>
    %cst_14 = arith.constant 0.000000e+00 : f32
    %50 = vector.broadcast %cst_14 : f32 to vector<8x128xf32>
    %51 = arith.maximumf %49, %50 : vector<8x128xf32>
    %c0_15 = arith.constant 0 : index
    %c0_16 = arith.constant 0 : index
    %52 = vector.load %arg7[%c0_15, %c0_16] : memref<128x128xf32, #tpu.memory_space<vmem>>, vector<128x128xf32>
    %cst_17 = arith.constant dense<0.000000e+00> : vector<8x128xf32>
    %53 = tpu.matmul %51, %52, %cst_17 {dimension_numbers = #tpu.dot_dimension_numbers<[1], [0], [0], [1], [0, 0, 1, 1], [], []>} : vector<8x128xf32>, vector<128x128xf32>, vector<8x128xf32> -> vector<8x128xf32>
    %54 = vector.extract_strided_slice %1 {offsets = [7, 0], sizes = [1, 128], strides = [1, 1]} : vector<8x128xf32> to vector<1x128xf32>
    %55 = vector.broadcast %54 : vector<1x128xf32> to vector<8x128xf32>
    %56 = arith.addf %53, %55 : vector<8x128xf32>
    %cst_18 = arith.constant 0.000000e+00 : f32
    %57 = vector.broadcast %cst_18 : f32 to vector<8x128xf32>
    %58 = arith.maximumf %56, %57 : vector<8x128xf32>
    %c0_19 = arith.constant 0 : index
    %c0_20 = arith.constant 0 : index
    %59 = vector.load %arg8[%c0_19, %c0_20] : memref<1x128xf32, #tpu.memory_space<vmem>>, vector<1x128xf32>
    %60 = vector.broadcast %59 : vector<1x128xf32> to vector<8x128xf32>
    %61 = arith.mulf %58, %60 : vector<8x128xf32>
    %cst_21 = arith.constant dense<0.000000e+00> : vector<8xf32>
    %62 = vector.multi_reduction <add>, %61, %cst_21 [1] : vector<8x128xf32> to vector<8xf32>
    %63 = vector.shape_cast %62 : vector<8xf32> to vector<8x1xf32>
    %c1 = arith.constant 1 : index
    %64 = memref.load %arg1[%c1] : memref<2xf32, #tpu.memory_space<smem>>
    %65 = vector.broadcast %64 : f32 to vector<8x1xf32>
    %66 = arith.addf %63, %65 : vector<8x1xf32>
    %c0_22 = arith.constant 0 : index
    %c0_23 = arith.constant 0 : index
    %67 = vector.load %arg9[%c0_22, %c0_23] : memref<8x1xf32, #tpu.memory_space<vmem>>, vector<8x1xf32>
    tpu.vector_store %arg9[%c0_22, %c0_23], %66 {strides = array<i32>} : memref<8x1xf32, #tpu.memory_space<vmem>>, vector<8x1xf32>,
    return
  }
  func.func @transform_0(%arg0: i32) -> i32 {
    %c0_i32 = arith.constant 0 : i32
    %c0_i32_0 = arith.constant 0 : i32
    return %c0_i32 : i32
  }
  func.func @transform_1(%arg0: i32) -> (i32, i32) {
    %c0_i32 = arith.constant 0 : i32
    %c0_i32_0 = arith.constant 0 : i32
    return %arg0, %c0_i32 : i32, i32
  }
  func.func @transform_2(%arg0: i32) -> (i32, i32) {
    %c0_i32 = arith.constant 0 : i32
    %c0_i32_0 = arith.constant 0 : i32
    %c0_i32_1 = arith.constant 0 : i32
    return %c0_i32, %c0_i32_0 : i32, i32
  }
  func.func @transform_3(%arg0: i32) -> (i32, i32) {
    %c0_i32 = arith.constant 0 : i32
    %c0_i32_0 = arith.constant 0 : i32
    %c0_i32_1 = arith.constant 0 : i32
    return %c0_i32, %c0_i32_0 : i32, i32
  }
  func.func @transform_4(%arg0: i32) -> (i32, i32) {
    %c0_i32 = arith.constant 0 : i32
    %c0_i32_0 = arith.constant 0 : i32
    %c0_i32_1 = arith.constant 0 : i32
    return %c0_i32, %c0_i32_0 : i32, i32
  }
  func.func @transform_5(%arg0: i32) -> (i32, i32) {
    %c0_i32 = arith.constant 0 : i32
    %c0_i32_0 = arith.constant 0 : i32
    %c0_i32_1 = arith.constant 0 : i32
    return %c0_i32, %c0_i32_0 : i32, i32
  }
  func.func @transform_6(%arg0: i32) -> (i32, i32) {
    %c0_i32 = arith.constant 0 : i32
    %c0_i32_0 = arith.constant 0 : i32
    %c0_i32_1 = arith.constant 0 : i32
    return %c0_i32, %c0_i32_0 : i32, i32
  }
  func.func @transform_7(%arg0: i32) -> (i32, i32) {
    %c0_i32 = arith.constant 0 : i32
    %c0_i32_0 = arith.constant 0 : i32
    %c0_i32_1 = arith.constant 0 : i32
    return %c0_i32, %c0_i32_0 : i32, i32
  }
  func.func @transform_8(%arg0: i32) -> (i32, i32) {
    %c0_i32 = arith.constant 0 : i32
    %c0_i32_0 = arith.constant 0 : i32
    return %arg0, %c0_i32 : i32, i32
  }
}

</mosaic_0001>

<bundles_post_ra>
// kernel: fullnet_pallas.1
= control target key start
LH: loop header
LB: loop body
LE: loop exit
PB: predicated region body
PF: predicated region fallthrough
CT: control target
= control target key end

     0   :  { %13 = vsyncpa [#allocation4], 0  ;;  %s949_s0 = inlined_call_operand.vmem [shape: f32[2], index: 0, kind: input, shape index: {}]   ;;  %s950_s1 = inlined_call_operand.vmem [shape: f32[8,8], index: 1, kind: input, shape index: {}]   ;;  %s951_s2 = inlined_call_operand.vmem [shape: f32[1,8], index: 2, kind: input, shape index: {}]   ;;  %s952_s3 = inlined_call_operand.vmem [shape: f32[8,128], index: 3, kind: input, shape index: {}]   ;;  %s953_s4 = inlined_call_operand.hbm [shape: f32[128,128], index: 4, kind: input, shape index: {}]   ;;  %s954_s5 = inlined_call_operand.hbm [shape: f32[128,128], index: 5, kind: input, shape index: {}]   ;;  %s955_s6 = inlined_call_operand.hbm [shape: f32[128,128], index: 6, kind: input, shape index: {}]   ;;  %s956_s7 = inlined_call_operand.vmem [shape: f32[1,128], index: 7, kind: input, shape index: {}]   ;;  %s957_s8 = inlined_call_operand.vmem [shape: f32[8,1], index: 8, kind: output, shape index: {}]  }
   0x1   :  { %14 = vsyncpa [#allocation3], 0 }
   0x2   :  { %15 = vsyncpa [#allocation7], 0  ;;  %s22_s29 = sshll.u32 %s949_s0, 4  ;;  %s772_s30 = smov [#allocation6]   ;;  %s23_s29 = int_to_ptr.vmem [resolvable:$true] %s22_s29 }
   0x3   :  { %s49_s9 = sshll.u32 %s772_s30, 4  ;;  %s688_s12 = scalar_lea.hbm %s954_s5, 2048  ;;  %s50_s9 = int_to_ptr.vmem [resolvable:$true] %s49_s9 }
   0x4   :  { %p689_p0 = scmp.ne.s32.totalorder %s954_s5, %s688_s12  ;;  %p692_p1 = scmp.lt.u32.totalorder %s688_s12, %s954_s5 }
   0x6   :  { %p694_p2 = pnand %p692_p1, %p689_p0 }
   0x8   :  { %697 = shalt.err (!%p694_p2)
}
   0x9   :  { %s698_s17 = scalar_lea.vmem %s50_s9, 2048  ;;  %p703_p4 = scmp.lt.s32.totalorder %s50_s9, %s50_s9 }
   0xa   :  { %p699_p3 = scmp.ne.s32.totalorder %s50_s9, %s698_s17  ;;  %p704_p5 = scmp.lt.s32.totalorder %s698_s17, %s698_s17 }
   0xc   :  { %p705_p6 = por %p704_p5, %p703_p4 }
   0xe   :  { %p706_p7 = pnand %p705_p6, %p699_p3 }
  0x10   :  { %709 = shalt.err (!%p706_p7)
}
  0x11   :  { %s773_s0 = smov 128   ;;  %s774_s18 = smov 8  }
  0x12   :  { %55 = dma.hbm_to_vmem [thread:$0]  %s954_s5, 2048, %s50_s9, [#allocation7], %s773_s0, %s773_s0, %s774_s18  }
  0x13   :  { %s710_s21 = scalar_lea.vmem %s23_s29, 16  ;;  %p715_p9 = scmp.lt.s32.totalorder %s23_s29, %s23_s29 }
  0x14   :  { %p711_p8 = scmp.ne.s32.totalorder %s23_s29, %s710_s21  ;;  %p716_p10 = scmp.lt.s32.totalorder %s710_s21, %s710_s21 }
  0x16   :  { %p717_p11 = por %p716_p10, %p715_p9 }
  0x18   :  { %p718_p12 = pnand %p717_p11, %p711_p8 }
  0x1a   :  { %721 = shalt.err (!%p718_p12)
}
  0x1b   :  { %s775_s22 = smov [#allocation2]   ;;  %s776_s23 = smov [#allocation5]  }
  0x1c   :  { %25 = dma.vmem_to_smem %s23_s29, 16, %s775_s22, [#allocation4]  }
  0x1d   :  { %s37_s24 = sshll.u32 %s776_s23, 4  ;;  %s777_s25 = smov [#allocation8]   ;;  %s38_s24 = int_to_ptr.vmem [resolvable:$true] %s37_s24 }
  0x1e   :  { %s61_s26 = sshll.u32 %s777_s25, 4  ;;  %s722_s5 = scalar_lea.hbm %s953_s4, 2048  ;;  %s847_s26 = int_to_ptr.vmem [resolvable:$true] %s61_s26 }
  0x1f   :  { %p723_p13 = scmp.ne.s32.totalorder %s953_s4, %s722_s5  ;;  %p726_p0 = scmp.lt.u32.totalorder %s722_s5, %s953_s4 }
  0x21   :  { %p728_p1 = pnand %p726_p0, %p723_p13 }
  0x23   :  { %731 = shalt.err (!%p728_p1)
}
  0x24   :  { %s732_s29 = scalar_lea.vmem %s38_s24, 2048  ;;  %p737_p3 = scmp.lt.s32.totalorder %s38_s24, %s38_s24 }
  0x25   :  { %p733_p2 = scmp.ne.s32.totalorder %s38_s24, %s732_s29  ;;  %p738_p4 = scmp.lt.s32.totalorder %s732_s29, %s732_s29 }
  0x27   :  { %p739_p5 = por %p738_p4, %p737_p3 }
  0x29   :  { %p740_p6 = pnand %p739_p5, %p733_p2 }
  0x2b   :  { %743 = shalt.err (!%p740_p6)
}
  0x2c   :  { %43 = dma.hbm_to_vmem [thread:$0]  %s953_s4, 2048, %s38_s24, [#allocation3], %s773_s0, %s773_s0, %s774_s18  }
  0x2d   :  { %s744_s16 = scalar_lea.hbm %s955_s6, 2048 }
  0x2e   :  { %p745_p7 = scmp.ne.s32.totalorder %s955_s6, %s744_s16  ;;  %p748_p8 = scmp.lt.u32.totalorder %s744_s16, %s955_s6 }
  0x30   :  { %p750_p9 = pnand %p748_p8, %p745_p7 }
  0x32   :  { %753 = shalt.err (!%p750_p9)
}
  0x33   :  { %s754_s22 = scalar_lea.vmem %s847_s26, 2048  ;;  %p759_p11 = scmp.lt.s32.totalorder %s847_s26, %s847_s26 }
  0x34   :  { %p755_p10 = scmp.ne.s32.totalorder %s847_s26, %s754_s22  ;;  %p760_p12 = scmp.lt.s32.totalorder %s754_s22, %s754_s22 }
  0x36   :  { %p761_p13 = por %p760_p12, %p759_p11 }
  0x38   :  { %p762_p0 = pnand %p761_p13, %p755_p10 }
  0x3a   :  { %765 = shalt.err (!%p762_p0)
}
  0x3b   :  { %67 = dma.hbm_to_vmem [thread:$0]  %s955_s6, 2048, %s847_s26, [#allocation7], %s773_s0, %s773_s0, %s774_s18  }
  0x3c   :  { %766 = dma.done.wait [#allocation4], 16  }
  0x3d   :  { %767 = vsyncadd [#allocation4], 4294967280 }
  0x3e   :  { %768 = dma.done.wait [#allocation3], 2048  }
  0x3f   :  { %769 = vsyncadd [#allocation3], 4294965248 }
  0x40   :  { %770 = dma.done.wait [#allocation7], 4096  }
  0x41   :  { %771 = vsyncadd [#allocation7], 4294963200 }
  0x42   :  { %82 = sfence }
  0x43   :  { %v83_v0 = vld [vmem:[%s950_s1] sm:$0xff]  ;;  %vm93_vm0 = vcmask 64512   ;;  %v778_v3 = vmov 1   ;;  %v779_v4 = vmov 0   ;;  %v145_v6 = vld [vmem:[#allocation5 + $0x8] sm:$0xff]  ;;  %v146_v7 = vld [vmem:[#allocation5 + $0x10] sm:$0xff]  ;;  %v107_v54 = vlaneseq }
  0x44   :  { %v439_v1 = vld [vmem:[%s951_s2] ss:$0 sm:$0xff]  ;;  %683 = vset.pattern.permute.xlu1 %v778_v3  ;;  %682 = vset.pattern.permute.xlu0 %v779_v4  ;;  %v780_v8 = vmov 0.0|0.0   ;;  %v147_v10 = vld [vmem:[#allocation5 + $0x18] sm:$0xff]  ;;  %v781_v13 = vmov 2   ;;  %v149_v15 = vld [vmem:[#allocation5 + $0x28] sm:$0xff] }
  0x45   :  { %v92_v2 = vmul.f32 %v439_v1, %v83_v0  ;;  %v144_v5 = vld [vmem:[#allocation5] sm:$0xff]  ;;  %113 = vperm.xlu1 %683, %v83_v0   ;;  %598 = vmatprep.subr.bf16.mxu0 %v780_v8  ;;  %v602_v12 = vpack.c.bf16 %v147_v10, %v146_v7  ;;  %v150_v17 = vld [vmem:[#allocation5 + $0x30] sm:$0xff]  ;;  %v151_v18 = vld [vmem:[#allocation5 + $0x38] sm:$0xff]  ;;  %vm782_vm1 = vmmov 0   ;;  %v783_v32 = vmov 0.0   ;;  %s97_s1 = sld [smem:[#allocation2]] }
  0x46   :  { %v599_v9 = vpack.c.bf16 %v145_v6, %v144_v5  ;;  %622 = vmatprep.subr.bf16.mxu1 %v780_v8  ;;  %v148_v14 = vld [vmem:[#allocation5 + $0x20] sm:$0xff]  ;;  %v608_v19 = vpack.c.bf16 %v151_v18, %v150_v17  ;;  %v153_v21 = vld [vmem:[#allocation5 + $0x48] sm:$0xff]  ;;  %v154_v23 = vld [vmem:[#allocation5 + $0x50] sm:$0xff]  ;;  %525 = vmatprep.mubr.msk.f32.mxu0 %vm782_vm1, %v783_v32  ;;  %v911_v55 = vshrl.u32 %v107_v54, 7  ;;  %s441_s18 = sld [smem:[#allocation2 + $0x1]]  ;;  %vm430_vm2 = vcmask 7168  }
  0x47   :  { %v94_v11 = vsel %vm93_vm0, %v92_v2, 0.0  ;;  %v605_v16 = vpack.c.bf16 %v149_v15, %v148_v14  ;;  %v152_v20 = vld [vmem:[#allocation5 + $0x40] sm:$0xff]  ;;  %v155_v24 = vld [vmem:[#allocation5 + $0x58] sm:$0xff]  ;;  %v157_v27 = vld [vmem:[#allocation5 + $0x68] sm:$0xff]  ;;  %560 = vmatprep.mubr.msk.f32.mxu1 %vm782_vm1, %v783_v32 }
  0x48   :  { %95 = vadd.xlane.f32.xlu0 %v94_v11  ;;  %600 = vmatpush3.bf16.msra.mxu0 %v599_v9  ;;  %v611_v22 = vpack.c.bf16 %v153_v21, %v152_v20  ;;  %v614_v25 = vpack.c.bf16 %v155_v24, %v154_v23  ;;  %v156_v26 = vld [vmem:[#allocation5 + $0x60] sm:$0xff]  ;;  %v158_v29 = vld [vmem:[#allocation5 + $0x70] sm:$0xff]  ;;  %v159_v30 = vld [vmem:[#allocation5 + $0x78] sm:$0xff]  ;;  %v118_v58 = vsub.s32 1, %v911_v55  ;;  %v109_v61 = vsub.s32 0, %v911_v55 }
  0x49   :  { %601 = vmatprep.subr.bf16.mxu0 %v780_v8  ;;  %684 = vset.pattern.permute.xlu1 %v781_v13  ;;  %v617_v28 = vpack.c.bf16 %v157_v27, %v156_v26  ;;  %v620_v31 = vpack.c.bf16 %v159_v30, %v158_v29  ;;  %v235_v33 = vld [vmem:[#allocation6] sm:$0xff]  ;;  %v236_v34 = vld [vmem:[#allocation6 + $0x8] sm:$0xff]  ;;  %v237_v35 = vld [vmem:[#allocation6 + $0x10] sm:$0xff]  ;;  %v128_v1 = vsub.s32 2, %v911_v55  ;;  %v134_v6 = vsub.s32 3, %v911_v55 }
  0x4a   :  { %123 = vperm.xlu1 %684, %v83_v0   ;;  %v623_v36 = vpack.c.bf16 %v236_v34, %v235_v33  ;;  %v238_v37 = vld [vmem:[#allocation6 + $0x18] sm:$0xff]  ;;  %v239_v39 = vld [vmem:[#allocation6 + $0x20] sm:$0xff]  ;;  %v240_v40 = vld [vmem:[#allocation6 + $0x28] sm:$0xff]  ;;  %v253_v54 = vsub.s32 6, %v911_v55 }
  0x4b   :  { %v626_v38 = vpack.c.bf16 %v238_v37, %v237_v35  ;;  %v629_v41 = vpack.c.bf16 %v240_v40, %v239_v39  ;;  %v241_v42 = vld [vmem:[#allocation6 + $0x30] sm:$0xff]  ;;  %v242_v43 = vld [vmem:[#allocation6 + $0x38] sm:$0xff]  ;;  %v243_v45 = vld [vmem:[#allocation6 + $0x40] sm:$0xff]  ;;  %v98_v56 = vstv %s97_s1 }
  0x4c   :  { %603 = vmatpush3.bf16.msra.mxu0 %v602_v12  ;;  %624 = vmatpush3.bf16.msra.mxu1 %v623_v36  ;;  %v632_v44 = vpack.c.bf16 %v242_v43, %v241_v42  ;;  %v244_v46 = vld [vmem:[#allocation6 + $0x48] sm:$0xff]  ;;  %v245_v48 = vld [vmem:[#allocation6 + $0x50] sm:$0xff]  ;;  %v246_v49 = vld [vmem:[#allocation6 + $0x58] sm:$0xff] }
  0x4d   :  { %604 = vmatprep.subr.bf16.mxu0 %v780_v8  ;;  %625 = vmatprep.subr.bf16.mxu1 %v780_v8  ;;  %v635_v47 = vpack.c.bf16 %v244_v46, %v243_v45  ;;  %v638_v50 = vpack.c.bf16 %v246_v49, %v245_v48  ;;  %v247_v51 = vld [vmem:[#allocation6 + $0x60] sm:$0xff]  ;;  %v248_v52 = vld [vmem:[#allocation6 + $0x68] sm:$0xff]  ;;  %v249_v21 = vld [vmem:[#allocation6 + $0x70] sm:$0xff]  ;;  %v162_v45 = vsub.s32 5, %v911_v55 }
  0x4e   :  { %v641_v53 = vpack.c.bf16 %v248_v52, %v247_v51  ;;  %v917_v60 = vld [vmem:[%s952_s3] sm:$0xff]  ;;  %v328_v26 = vld [vmem:[#allocation8 + $0x10] sm:$0xff]  ;;  %v333_v34 = vld [vmem:[#allocation8 + $0x38] sm:$0xff] }
  0x4f   :  { %v110_v2 = vrot.slane %v917_v60, %v109_v61  ;;  %v129_v5 = vrot.slane %v917_v60, %v128_v1  ;;  %v135_v11 = vrot.slane %v917_v60, %v134_v6  ;;  %v326_v24 = vld [vmem:[#allocation8] sm:$0xff]  ;;  %v335_v37 = vld [vmem:[#allocation8 + $0x48] sm:$0xff]  ;;  %v336_v39 = vld [vmem:[#allocation8 + $0x50] sm:$0xff]  ;;  %v163_v46 = vrot.slane %v917_v60, %v162_v45 }
  0x50   :  { %606 = vmatpush3.bf16.msra.mxu0 %v605_v16  ;;  %627 = vmatpush3.bf16.msra.mxu1 %v626_v38  ;;  %v330_v30 = vld [vmem:[#allocation8 + $0x20] sm:$0xff]  ;;  %v337_v40 = vld [vmem:[#allocation8 + $0x58] sm:$0xff]  ;;  %v339_v43 = vld [vmem:[#allocation8 + $0x68] sm:$0xff]  ;;  %v344_v61 = vsub.s32 7, %v911_v55 }
  0x51   :  { %607 = vmatprep.subr.bf16.mxu0 %v780_v8  ;;  %628 = vmatprep.subr.bf16.mxu1 %v780_v8  ;;  %v334_v36 = vld [vmem:[#allocation8 + $0x40] sm:$0xff]  ;;  %v340_v51 = vld [vmem:[#allocation8 + $0x70] sm:$0xff]  ;;  %v341_v52 = vld [vmem:[#allocation8 + $0x78] sm:$0xff] }
  0x52   :  { %v659_v38 = vpack.c.bf16 %v335_v37, %v334_v36  ;;  %v338_v42 = vld [vmem:[#allocation8 + $0x60] sm:$0xff] }
  0x54   :  { %609 = vmatpush3.bf16.msra.mxu0 %v608_v19  ;;  %630 = vmatpush3.bf16.msra.mxu1 %v629_v41  ;;  %v662_v41 = vpack.c.bf16 %v337_v40, %v336_v39 }
  0x55   :  { %610 = vmatprep.subr.bf16.mxu0 %v780_v8  ;;  %631 = vmatprep.subr.bf16.mxu1 %v780_v8 }
  0x58   :  { %612 = vmatpush3.bf16.msra.mxu0 %v611_v22  ;;  %633 = vmatpush3.bf16.msra.mxu1 %v632_v44  ;;  %v250_v22 = vld [vmem:[#allocation6 + $0x78] sm:$0xff]  ;;  %v665_v44 = vpack.c.bf16 %v339_v43, %v338_v42 }
  0x59   :  { %613 = vmatprep.subr.bf16.mxu0 %v780_v8  ;;  %634 = vmatprep.subr.bf16.mxu1 %v780_v8  ;;  %v644_v23 = vpack.c.bf16 %v250_v22, %v249_v21 }
  0x5c   :  { %615 = vmatpush3.bf16.msra.mxu0 %v614_v25  ;;  %636 = vmatpush3.bf16.msra.mxu1 %v635_v47  ;;  %v327_v25 = vld [vmem:[#allocation8 + $0x8] sm:$0xff] }
  0x5d   :  { %616 = vmatprep.subr.bf16.mxu0 %v780_v8  ;;  %637 = vmatprep.subr.bf16.mxu1 %v780_v8  ;;  %v647_v27 = vpack.c.bf16 %v327_v25, %v326_v24 }
  0x5e   :  { %104 = vperm.xlu0 %682, %v83_v0   ;;  %v119_v0 = vrot.slane %v917_v60, %v118_v58 }
  0x60   :  { %618 = vmatpush3.bf16.msra.mxu0 %v617_v28  ;;  %639 = vmatpush3.bf16.msra.mxu1 %v638_v50  ;;  %v329_v28 = vld [vmem:[#allocation8 + $0x18] sm:$0xff] }
  0x61   :  { %619 = vmatprep.subr.bf16.mxu0 %v780_v8  ;;  %640 = vmatprep.subr.bf16.mxu1 %v780_v8  ;;  %v650_v29 = vpack.c.bf16 %v329_v28, %v328_v26 }
  0x62   :  { %685 = vset.pattern.permute.xlu0 %v781_v13  ;;  %v140_v13 = vsub.s32 4, %v911_v55 }
  0x64   :  { %621 = vmatpush3.bf16.msra.mxu0 %v620_v31  ;;  %642 = vmatpush3.bf16.msra.mxu1 %v641_v53  ;;  %v141_v17 = vrot.slane %v917_v60, %v140_v13  ;;  %v331_v31 = vld [vmem:[#allocation8 + $0x28] sm:$0xff]  ;;  %v668_v53 = vpack.c.bf16 %v341_v52, %v340_v51 }
  0x65   :  { %646 = vmatprep.subr.bf16.mxu0 %v780_v8  ;;  %643 = vmatprep.subr.bf16.mxu1 %v780_v8  ;;  %v653_v33 = vpack.c.bf16 %v331_v31, %v330_v30 }
  0x68   :  { %645 = vmatpush3.bf16.msra.mxu1 %v644_v23 }
  0xc4   :  { %v114_v63 = vpop.permute.xlu1 %113 }
  0xc5   :  { %v120_v3 = vmul.f32 %v119_v0, %v114_v63 }
  0xc9   :  { %v124_v9 = vpop.permute.xlu1 %123 }
  0xca   :  { %v130_v12 = vmul.f32 %v129_v5, %v124_v9  ;;  %v428_v5 = vstv %s441_s18 }
  0xd5   :  { %v96_v57 = vpop.xlane.xlu0 %95 }
  0xd6   :  { %v99_v59 = vadd.f32 %v98_v56, %v96_v57  ;;  %v254_v56 = vrot.slane %v917_v60, %v253_v54 }
  0xd8   :  { %v100_v62 = vmul.f32 1.442695, %v99_v59 }
  0xda   :  { %686 = vpow2.f32 %v100_v62  ;;  %v345_v62 = vrot.slane %v917_v60, %v344_v61 }
  0xdd   :  { %v105_v4 = vpop.permute.xlu0 %104 }
  0xde   :  { %v111_v7 = vmul.f32 %v110_v2, %v105_v4  ;;  %v440_v2 = vld [vmem:[%s956_s7] ss:$0 sm:$0xff] }
  0xe0   :  { %v121_v10 = vadd.f32 %v120_v3, %v111_v7 }
  0xe2   :  { %v131_v15 = vadd.f32 %v130_v12, %v121_v10 }
  0xe4   :  { %v687_v14 = vpop.eup %686 }
  0xe5   :  { %v136_v16 = vmul.f32 %v687_v14, %v135_v11 }
  0xe7   :  { %v137_v18 = vadd.f32 %v136_v16, %v131_v15 }
  0xe9   :  { %v142_v19 = vadd.f32 %v141_v17, %v137_v18 }
  0xeb   :  { %v143_v20 = vmax.f32 %v142_v19, 0.0 }
  0xed   :  { %526 = vmatmul.mubr.f32.vlgmr.msra.gmra.mrb[0].mxu0 %v143_v20 }
  0xee   :  { %595 = vmatprep.mubr.msk.f32.mxu0 %vm782_vm1, %v783_v32  ;;  %648 = vmatpush3.bf16.msra.mxu0 %v647_v27  ;;  %v332_v32 = vld [vmem:[#allocation8 + $0x30] sm:$0xff] }
  0xef   :  { %649 = vmatprep.subr.bf16.mxu0 %v780_v8  ;;  %v656_v35 = vpack.c.bf16 %v333_v34, %v332_v32 }
  0xf2   :  { %651 = vmatpush3.bf16.msra.mxu0 %v650_v29 }
  0xf3   :  { %652 = vmatprep.subr.bf16.mxu0 %v780_v8 }
  0xf6   :  { %654 = vmatpush3.bf16.msra.mxu0 %v653_v33 }
  0xf7   :  { %655 = vmatprep.subr.bf16.mxu0 %v780_v8 }
  0xfa   :  { %657 = vmatpush3.bf16.msra.mxu0 %v656_v35 }
  0xfb   :  { %658 = vmatprep.subr.bf16.mxu0 %v780_v8 }
  0xfe   :  { %660 = vmatpush3.bf16.msra.mxu0 %v659_v38 }
  0xff   :  { %661 = vmatprep.subr.bf16.mxu0 %v780_v8 }
 0x102   :  { %663 = vmatpush3.bf16.msra.mxu0 %v662_v41 }
 0x103   :  { %664 = vmatprep.subr.bf16.mxu0 %v780_v8 }
 0x106   :  { %666 = vmatpush3.bf16.msra.mxu0 %v665_v44 }
 0x107   :  { %667 = vmatprep.subr.bf16.mxu0 %v780_v8 }
 0x10a   :  { %669 = vmatpush3.bf16.msra.mxu0 %v668_v53 }
 0x1c0   :  { %v230_v47 = vpop.f32.mrb[0].mxu0 }
 0x1c1   :  { %v231_v48 = vadd.f32 %v230_v47, %v163_v46  ;;  %v527_v49 = vpop.f32.mrb[1].mxu0 }
 0x1c3   :  { %v234_v50 = vmax.f32 %v231_v48, 0.0 }
 0x1c5   :  { %561 = vmatmul.mubr.f32.vlgmr.msra.gmra.mrb[0].mxu1 %v234_v50 }
 0x298   :  { %v321_v57 = vpop.f32.mrb[0].mxu1 }
 0x299   :  { %v322_v58 = vadd.f32 %v321_v57, %v254_v56  ;;  %v562_v8 = vpop.f32.mrb[1].mxu1 }
 0x29b   :  { %v325_v59 = vmax.f32 %v322_v58, 0.0 }
 0x29d   :  { %596 = vmatmul.mubr.f32.vlgmr.msra.gmra.mrb[2].mxu0 %v325_v59 }
 0x370   :  { %v412_v63 = vpop.f32.mrb[2].mxu0 }
 0x371   :  { %v413_v0 = vadd.f32 %v412_v63, %v345_v62  ;;  %v597_v1 = vpop.f32.mrb[3].mxu0 }
 0x373   :  { %v416_v3 = vmax.f32 %v413_v0, 0.0 }
 0x375   :  { %v424_v4 = vmul.f32 %v440_v2, %v416_v3 }
 0x377   :  { %425 = vadd.xlane.f32.xlu1 %v424_v4 }
 0x404   :  { %v426_v6 = vpop.xlane.xlu1 %425 }
 0x405   :  { %v429_v7 = vadd.f32 %v428_v5, %v426_v6 }
 0x407   :  { %431 = vst.msk [vmem:[%s957_s8] sm:$0xff] %vm430_vm2, %v429_v7 }
 0x408   :  { %436 = vsyncpa [#allocation3], 1 }
 0x409   :  { %437 = vsyncpa [#allocation7], 1 }
 0x40a   :  { %438 = vsyncpa [#allocation4], 1 }

</bundles_post_ra>
